<compile_context>
chip_gen: v7x
topology: tpu7x:2x2x1
jax: 0.10.0
libtpu: 0.0.40
codegen_flags: <defaults>
</compile_context>

<pallas_src>
import jax
import jax.numpy as jnp
from jax.experimental import pallas as pl
from jax.experimental.pallas import tpu as pltpu


def _make_kernel(compute_dtype):
    def kernel(im_ref,                               # (TB, 2*hw)  f32 streamed
               w1_ref, b1_ref,                       # (2*hw, 64) block-diag, (1, 64)
               w2_ref, b2_ref,                       # (64, PW), (1, PW)  -> [c1 | c2 | 0]
               lw1_ref, lb1_ref,                     # (PW, 12), (1, 12)
               lw2_ref, lb2_ref,                     # (12, 8),  (1, 8)
               lw3_ref, lb3_ref,                     # (8, PW),  (1, PW)  -> out in cols 20:22
               out_ref):                             # (TB, PW)  f32
        # Cast (if any) happens here, after the f32 DMA, right before the MXU dot.
        im = im_ref[...].astype(compute_dtype)

        # Fused Rnumber hidden layer for both channels: one dot against the
        # block-diagonal [rw1 0; 0 rw1] weight -> h = [h1 | h2]  (TB, 64).
        h = jnp.maximum(
            jnp.dot(im, w1_ref[...], preferred_element_type=jnp.float32) + b1_ref[...],
            0.0)

        # Rnumber output layer, pre-packed into disjoint lane ranges:
        # cat == [c1 | c2 | 0] == torch.cat((c1, c2), 1).
        cat = jnp.dot(h, w2_ref[...], preferred_element_type=jnp.float32) + b2_ref[...]

        # `lesser` MLP: Linear(20,12)-ReLU-Linear(12,8)-ReLU-Linear(8,2).
        # lw1 is zero-padded on its input dim so `cat` feeds it directly (no slice).
        m1 = jnp.maximum(
            jnp.dot(cat, lw1_ref[...], preferred_element_type=jnp.float32) + lb1_ref[...],
            0.0)
        m2 = jnp.maximum(
            jnp.dot(m1, lw2_ref[...], preferred_element_type=jnp.float32) + lb2_ref[...],
            0.0)
        outp = jnp.dot(m2, lw3_ref[...], preferred_element_type=jnp.float32) + lb3_ref[...]

        # One store per grid step: packed slab [c1 | c2 | out].
        out_ref[...] = cat + outp

    return kernel


def init_params(key, hw, rnum_hidden=32, rnum_out=10):
    """Deterministic PyTorch-style uniform init. Weights stored as (in, out)."""
    def linear(k, fan_in, fan_out):
        kw, kb = jax.random.split(k)
        bound = 1.0 / jnp.sqrt(fan_in)
        w = jax.random.uniform(kw, (fan_in, fan_out), jnp.float32, -bound, bound)
        b = jax.random.uniform(kb, (1, fan_out), jnp.float32, -bound, bound)
        return w, b

    k = jax.random.split(key, 5)
    rw1, rb1 = linear(k[0], hw, rnum_hidden)            # Rnumber layer 1
    rw2, rb2 = linear(k[1], rnum_hidden, rnum_out)      # Rnumber layer 2
    lw1, lb1 = linear(k[2], 2 * rnum_out, 12)           # lesser Linear(20, 12)
    lw2, lb2 = linear(k[3], 12, 8)                      # lesser Linear(12, 8)
    lw3, lb3 = linear(k[4], 8, 2)                       # lesser Linear(8, 2)
    return (rw1, rb1, rw2, rb2, lw1, lb1, lw2, lb2, lw3, lb3)


def _round_up(v, m):
    return -(-v // m) * m


def _pick_batch_block(B, block_rows, row_bytes):
    """Batch rows per grid step.

    Rules: multiple of 8 (sublane tile) unless it equals the full batch dim; at
    least 2 grid blocks when B > 8 so the "parallel" grid axis can be sharded
    across v7x's two TensorCores; capped so double-buffered per-step IO stays
    well inside every generation's VMEM (v7x: 64 MiB/TC, v5e scoped default 16 MiB).
    """
    if B <= 8:
        return B                                      # single block == full batch dim
    tb = _round_up(max(8, min(block_rows, B)), 8)
    tb = min(tb, _round_up(pl.cdiv(B, 2), 8))         # guarantee >= 2 blocks (megacore)
    budget_rows = max(8, ((24 << 20) // (2 * row_bytes)) // 8 * 8)
    return max(8, min(tb, budget_rows))


def lesser_alws_forward(x, params, *, matmul_dtype=jnp.float32, block_rows=2048,
                        pad_out_lanes=False):
    """x: (B, 2, H, W) float32  ->  (out (B, 2), c1 (B, 10), c2 (B, 10)).

    matmul_dtype: dtype of the MXU operands for the dominant image matmul. Default
      f32 (exact; c1/c2 are direct outputs). bf16 is available but since the input
      is streamed as f32 anyway it only buys MXU throughput, which is not the
      bottleneck — keep f32 unless profiling says otherwise.
    block_rows: batch rows per grid step (sweep 1024-4096; auto-capped for VMEM).
    pad_out_lanes: pad the packed [c1|c2|out] slab from 22 to 128 lanes (lane-dense
      stores, +~20% HBM write bytes).
    """
    B, C, H, W = x.shape
    assert C == 2, "LesserALWS splits the input into exactly 2 channels"
    hw = H * W

    rw1, rb1, rw2, rb2, lw1, lb1, lw2, lb2, lw3, lb3 = params
    rh = rw1.shape[1]                    # Rnumber hidden width (32)
    rnum_out = rw2.shape[1]              # 10
    n_out = lw3.shape[1]                 # 2
    packw = 2 * rnum_out + n_out         # packed output lanes: [c1 | c2 | out]
    packw_store = 128 if pad_out_lanes else packw

    # --- tiny packed weights (KB-scale; built once, VMEM-resident across the grid) ---
    w1_blk = jnp.zeros((2 * hw, 2 * rh), jnp.float32)
    w1_blk = w1_blk.at[:hw, :rh].set(rw1).at[hw:, rh:].set(rw1)   # block-diag [rw1 0; 0 rw1]
    w1_blk = w1_blk.astype(matmul_dtype)
    b1_full = jnp.concatenate([rb1, rb1], axis=1)                 # (1, 2*rh)

    def place_cols(w, start):
        buf = jnp.zeros((w.shape[0], packw_store), jnp.float32)
        return buf.at[:, start:start + w.shape[1]].set(w)

    w2_pack = jnp.zeros((2 * rh, packw_store), jnp.float32)
    w2_pack = (w2_pack.at[:rh, :rnum_out].set(rw2)
                      .at[rh:, rnum_out:2 * rnum_out].set(rw2))
    b2_pack = place_cols(rb2, 0) + place_cols(rb2, rnum_out)
    lw1_p = jnp.zeros((packw_store, lw1.shape[1]), jnp.float32).at[:2 * rnum_out, :].set(lw1)
    lw3_p = place_cols(lw3, 2 * rnum_out)
    lb3_p = place_cols(lb3, 2 * rnum_out)

    # --- stream the ORIGINAL f32 array: free reshape, no transpose/pad/astype copy ---
    ims = x.reshape(B, 2 * hw)

    row_bytes = 2 * hw * ims.dtype.itemsize + packw_store * 4
    TB = _pick_batch_block(B, block_rows, row_bytes)
    grid = (pl.cdiv(B, TB),)             # ragged last block: Pallas clips the DMAs

    def _const(i):                       # weights/biases resident across grid steps
        return (0, 0)

    weight_args = (w1_blk, b1_full, w2_pack, b2_pack,
                   lw1_p, lb1, lw2, lb2, lw3_p, lb3_p)
    in_specs = [pl.BlockSpec((TB, 2 * hw), lambda i: (i, 0))]
    in_specs += [pl.BlockSpec(w.shape, _const) for w in weight_args]

    # Double-buffered per-step IO + slack for weights/intermediates; cap at 40 MiB
    # (safe on v7x's 64 MiB/TC, raises v5e's 16 MiB scoped default when needed).
    est = 2 * TB * row_bytes + (8 << 20)
    vmem_limit = int(min(max(est, 24 << 20), 40 << 20))

    packed = pl.pallas_call(
        _make_kernel(matmul_dtype),
        out_shape=jax.ShapeDtypeStruct((B, packw_store), jnp.float32),
        grid=grid,
        in_specs=in_specs,
        out_specs=pl.BlockSpec((TB, packw_store), lambda i: (i, 0)),
        compiler_params=pltpu.CompilerParams(
            dimension_semantics=("parallel",),       # megacore shards batch blocks
            vmem_limit_bytes=vmem_limit),
    )(ims, *weight_args)

    c1 = packed[:, 0:rnum_out]
    c2 = packed[:, rnum_out:2 * rnum_out]
    out = packed[:, 2 * rnum_out:2 * rnum_out + n_out]
    return out, c1, c2


def lesser_alws_reference(x, params):
    """Pure-JAX f32 reference for correctness checking."""
    B, _, H, W = x.shape
    rw1, rb1, rw2, rb2, lw1, lb1, lw2, lb2, lw3, lb3 = params
    im1 = x[:, 0].reshape(B, H * W)
    im2 = x[:, 1].reshape(B, H * W)

    def rnumber(im):
        h = jnp.maximum(im @ rw1 + rb1, 0.0)
        return h @ rw2 + rb2

    c1 = rnumber(im1)
    c2 = rnumber(im2)
    out = jnp.concatenate([c1, c2], axis=1)
    out = jnp.maximum(out @ lw1 + lb1, 0.0)
    out = jnp.maximum(out @ lw2 + lb2, 0.0)
    out = out @ lw3 + lb3
    return out, c1, c2


if __name__ == "__main__":
    key = jax.random.PRNGKey(0)
    kx, kp = jax.random.split(key)

    B, C, H, W = 2, 2, 16, 16            # x.split(1, dim=1) -> two 1-channel images
    x = jax.random.normal(kx, (B, C, H, W), jnp.float32)
    params = init_params(kp, H * W)

    ref_out, ref_c1, ref_c2 = lesser_alws_reference(x, params)

    # Default exact-f32 path: tight tolerance against the f32 reference.
    out, c1, c2 = jax.block_until_ready(lesser_alws_forward(x, params))
    assert out.shape == (B, 2) and c1.shape == (B, 10) and c2.shape == (B, 10)
    assert jnp.allclose(out, ref_out, atol=1e-3, rtol=1e-3)
    assert jnp.allclose(c1, ref_c1, atol=1e-3, rtol=1e-3)
    assert jnp.allclose(c2, ref_c2, atol=1e-3, rtol=1e-3)

    # Optional bf16 MXU-operand path (in-kernel cast, looser tolerance).
    out_bf, c1_bf, c2_bf = jax.block_until_ready(
        lesser_alws_forward(x, params, matmul_dtype=jnp.bfloat16))
    assert jnp.allclose(out_bf, ref_out, atol=5e-2, rtol=5e-2)
    assert jnp.allclose(c1_bf, ref_c1, atol=5e-2, rtol=5e-2)
    assert jnp.allclose(c2_bf, ref_c2, atol=5e-2, rtol=5e-2)

    # Ragged batch grid (3 blocks of 16 over B=40, no padding copy) + lane-padded output.
    B2 = 40
    x2 = jax.random.normal(jax.random.PRNGKey(1), (B2, C, H, W), jnp.float32)
    out2, c12, c22 = jax.block_until_ready(
        lesser_alws_forward(x2, params, block_rows=16, pad_out_lanes=True))
    r_out2, r_c12, r_c22 = lesser_alws_reference(x2, params)
    assert out2.shape == (B2, 2) and c12.shape == (B2, 10) and c22.shape == (B2, 10)
    assert jnp.allclose(out2, r_out2, atol=1e-3, rtol=1e-3)
    assert jnp.allclose(c12, r_c12, atol=1e-3, rtol=1e-3)
    assert jnp.allclose(c22, r_c22, atol=1e-3, rtol=1e-3)

    print("KERNEL_OK")
</pallas_src>

<mosaic_0001>
module attributes {stable_mosaic.version = 11 : i64} {
  func.func @kernel(%arg0: i32, %arg1: memref<2x512xf32, #tpu.memory_space<vmem>>, %arg2: memref<512x64xf32, #tpu.memory_space<vmem>>, %arg3: memref<1x64xf32, #tpu.memory_space<vmem>>, %arg4: memref<64x22xf32, #tpu.memory_space<vmem>>, %arg5: memref<1x22xf32, #tpu.memory_space<vmem>>, %arg6: memref<22x12xf32, #tpu.memory_space<vmem>>, %arg7: memref<1x12xf32, #tpu.memory_space<vmem>>, %arg8: memref<12x8xf32, #tpu.memory_space<vmem>>, %arg9: memref<1x8xf32, #tpu.memory_space<vmem>>, %arg10: memref<8x22xf32, #tpu.memory_space<vmem>>, %arg11: memref<1x22xf32, #tpu.memory_space<vmem>>, %arg12: memref<2x22xf32, #tpu.memory_space<vmem>>) attributes {dimension_semantics = [#tpu.dimension_semantics<parallel>], iteration_bounds = array<i64: 1>, scalar_prefetch = 0 : i64, scratch_operands = 0 : i64, tpu.core_type = #tpu.core_type<tc>, window_params = [{transform_indices = @transform_0, window_bounds = array<i64: 2, 512>}, {pipeline_mode = #tpu.pipeline_mode<synchronous>, transform_indices = @transform_1, window_bounds = array<i64: 512, 64>}, {pipeline_mode = #tpu.pipeline_mode<synchronous>, transform_indices = @transform_2, window_bounds = array<i64: 1, 64>}, {pipeline_mode = #tpu.pipeline_mode<synchronous>, transform_indices = @transform_3, window_bounds = array<i64: 64, 22>}, {pipeline_mode = #tpu.pipeline_mode<synchronous>, transform_indices = @transform_4, window_bounds = array<i64: 1, 22>}, {pipeline_mode = #tpu.pipeline_mode<synchronous>, transform_indices = @transform_5, window_bounds = array<i64: 22, 12>}, {pipeline_mode = #tpu.pipeline_mode<synchronous>, transform_indices = @transform_6, window_bounds = array<i64: 1, 12>}, {pipeline_mode = #tpu.pipeline_mode<synchronous>, transform_indices = @transform_7, window_bounds = array<i64: 12, 8>}, {pipeline_mode = #tpu.pipeline_mode<synchronous>, transform_indices = @transform_8, window_bounds = array<i64: 1, 8>}, {pipeline_mode = #tpu.pipeline_mode<synchronous>, transform_indices = @transform_9, window_bounds = array<i64: 8, 22>}, {pipeline_mode = #tpu.pipeline_mode<synchronous>, transform_indices = @transform_10, window_bounds = array<i64: 1, 22>}, {transform_indices = @transform_11, window_bounds = array<i64: 2, 22>}]} {
    %c0 = arith.constant 0 : index
    %c0_0 = arith.constant 0 : index
    %0 = vector.load %arg1[%c0, %c0_0] : memref<2x512xf32, #tpu.memory_space<vmem>>, vector<2x512xf32>
    %c0_1 = arith.constant 0 : index
    %c0_2 = arith.constant 0 : index
    %1 = vector.load %arg2[%c0_1, %c0_2] : memref<512x64xf32, #tpu.memory_space<vmem>>, vector<512x64xf32>
    %cst = arith.constant dense<0.000000e+00> : vector<2x64xf32>
    %2 = tpu.matmul %0, %1, %cst {dimension_numbers = #tpu.dot_dimension_numbers<[1], [0], [0], [1], [0, 0, 1, 1], [], []>} : vector<2x512xf32>, vector<512x64xf32>, vector<2x64xf32> -> vector<2x64xf32>
    %c0_3 = arith.constant 0 : index
    %c0_4 = arith.constant 0 : index
    %3 = vector.load %arg3[%c0_3, %c0_4] : memref<1x64xf32, #tpu.memory_space<vmem>>, vector<1x64xf32>
    %4 = vector.broadcast %3 : vector<1x64xf32> to vector<2x64xf32>
    %5 = arith.addf %2, %4 : vector<2x64xf32>
    %cst_5 = arith.constant 0.000000e+00 : f32
    %6 = vector.broadcast %cst_5 : f32 to vector<2x64xf32>
    %7 = arith.maximumf %5, %6 : vector<2x64xf32>
    %c0_6 = arith.constant 0 : index
    %c0_7 = arith.constant 0 : index
    %8 = vector.load %arg4[%c0_6, %c0_7] : memref<64x22xf32, #tpu.memory_space<vmem>>, vector<64x22xf32>
    %cst_8 = arith.constant dense<0.000000e+00> : vector<2x22xf32>
    %9 = tpu.matmul %7, %8, %cst_8 {dimension_numbers = #tpu.dot_dimension_numbers<[1], [0], [0], [1], [0, 0, 1, 1], [], []>} : vector<2x64xf32>, vector<64x22xf32>, vector<2x22xf32> -> vector<2x22xf32>
    %c0_9 = arith.constant 0 : index
    %c0_10 = arith.constant 0 : index
    %10 = vector.load %arg5[%c0_9, %c0_10] : memref<1x22xf32, #tpu.memory_space<vmem>>, vector<1x22xf32>
    %11 = vector.broadcast %10 : vector<1x22xf32> to vector<2x22xf32>
    %12 = arith.addf %9, %11 : vector<2x22xf32>
    %c0_11 = arith.constant 0 : index
    %c0_12 = arith.constant 0 : index
    %13 = vector.load %arg6[%c0_11, %c0_12] : memref<22x12xf32, #tpu.memory_space<vmem>>, vector<22x12xf32>
    %cst_13 = arith.constant dense<0.000000e+00> : vector<2x12xf32>
    %14 = tpu.matmul %12, %13, %cst_13 {dimension_numbers = #tpu.dot_dimension_numbers<[1], [0], [0], [1], [0, 0, 1, 1], [], []>} : vector<2x22xf32>, vector<22x12xf32>, vector<2x12xf32> -> vector<2x12xf32>
    %c0_14 = arith.constant 0 : index
    %c0_15 = arith.constant 0 : index
    %15 = vector.load %arg7[%c0_14, %c0_15] : memref<1x12xf32, #tpu.memory_space<vmem>>, vector<1x12xf32>
    %16 = vector.broadcast %15 : vector<1x12xf32> to vector<2x12xf32>
    %17 = arith.addf %14, %16 : vector<2x12xf32>
    %cst_16 = arith.constant 0.000000e+00 : f32
    %18 = vector.broadcast %cst_16 : f32 to vector<2x12xf32>
    %19 = arith.maximumf %17, %18 : vector<2x12xf32>
    %c0_17 = arith.constant 0 : index
    %c0_18 = arith.constant 0 : index
    %20 = vector.load %arg8[%c0_17, %c0_18] : memref<12x8xf32, #tpu.memory_space<vmem>>, vector<12x8xf32>
    %cst_19 = arith.constant dense<0.000000e+00> : vector<2x8xf32>
    %21 = tpu.matmul %19, %20, %cst_19 {dimension_numbers = #tpu.dot_dimension_numbers<[1], [0], [0], [1], [0, 0, 1, 1], [], []>} : vector<2x12xf32>, vector<12x8xf32>, vector<2x8xf32> -> vector<2x8xf32>
    %c0_20 = arith.constant 0 : index
    %c0_21 = arith.constant 0 : index
    %22 = vector.load %arg9[%c0_20, %c0_21] : memref<1x8xf32, #tpu.memory_space<vmem>>, vector<1x8xf32>
    %23 = vector.broadcast %22 : vector<1x8xf32> to vector<2x8xf32>
    %24 = arith.addf %21, %23 : vector<2x8xf32>
    %cst_22 = arith.constant 0.000000e+00 : f32
    %25 = vector.broadcast %cst_22 : f32 to vector<2x8xf32>
    %26 = arith.maximumf %24, %25 : vector<2x8xf32>
    %c0_23 = arith.constant 0 : index
    %c0_24 = arith.constant 0 : index
    %27 = vector.load %arg10[%c0_23, %c0_24] : memref<8x22xf32, #tpu.memory_space<vmem>>, vector<8x22xf32>
    %cst_25 = arith.constant dense<0.000000e+00> : vector<2x22xf32>
    %28 = tpu.matmul %26, %27, %cst_25 {dimension_numbers = #tpu.dot_dimension_numbers<[1], [0], [0], [1], [0, 0, 1, 1], [], []>} : vector<2x8xf32>, vector<8x22xf32>, vector<2x22xf32> -> vector<2x22xf32>
    %c0_26 = arith.constant 0 : index
    %c0_27 = arith.constant 0 : index
    %29 = vector.load %arg11[%c0_26, %c0_27] : memref<1x22xf32, #tpu.memory_space<vmem>>, vector<1x22xf32>
    %30 = vector.broadcast %29 : vector<1x22xf32> to vector<2x22xf32>
    %31 = arith.addf %28, %30 : vector<2x22xf32>
    %32 = arith.addf %12, %31 : vector<2x22xf32>
    %c0_28 = arith.constant 0 : index
    %c0_29 = arith.constant 0 : index
    %33 = vector.load %arg12[%c0_28, %c0_29] : memref<2x22xf32, #tpu.memory_space<vmem>>, vector<2x22xf32>
    tpu.vector_store %arg12[%c0_28, %c0_29], %32 {strides = array<i32>} : memref<2x22xf32, #tpu.memory_space<vmem>>, vector<2x22xf32>,
    return
  }
  func.func @transform_0(%arg0: i32) -> (i32, i32) {
    %c0_i32 = arith.constant 0 : i32
    %c0_i32_0 = arith.constant 0 : i32
    return %arg0, %c0_i32 : i32, i32
  }
  func.func @transform_1(%arg0: i32) -> (i32, i32) {
    %c0_i32 = arith.constant 0 : i32
    %c0_i32_0 = arith.constant 0 : i32
    %c0_i32_1 = arith.constant 0 : i32
    return %c0_i32, %c0_i32_0 : i32, i32
  }
  func.func @transform_2(%arg0: i32) -> (i32, i32) {
    %c0_i32 = arith.constant 0 : i32
    %c0_i32_0 = arith.constant 0 : i32
    %c0_i32_1 = arith.constant 0 : i32
    return %c0_i32, %c0_i32_0 : i32, i32
  }
  func.func @transform_3(%arg0: i32) -> (i32, i32) {
    %c0_i32 = arith.constant 0 : i32
    %c0_i32_0 = arith.constant 0 : i32
    %c0_i32_1 = arith.constant 0 : i32
    return %c0_i32, %c0_i32_0 : i32, i32
  }
  func.func @transform_4(%arg0: i32) -> (i32, i32) {
    %c0_i32 = arith.constant 0 : i32
    %c0_i32_0 = arith.constant 0 : i32
    %c0_i32_1 = arith.constant 0 : i32
    return %c0_i32, %c0_i32_0 : i32, i32
  }
  func.func @transform_5(%arg0: i32) -> (i32, i32) {
    %c0_i32 = arith.constant 0 : i32
    %c0_i32_0 = arith.constant 0 : i32
    %c0_i32_1 = arith.constant 0 : i32
    return %c0_i32, %c0_i32_0 : i32, i32
  }
  func.func @transform_6(%arg0: i32) -> (i32, i32) {
    %c0_i32 = arith.constant 0 : i32
    %c0_i32_0 = arith.constant 0 : i32
    %c0_i32_1 = arith.constant 0 : i32
    return %c0_i32, %c0_i32_0 : i32, i32
  }
  func.func @transform_7(%arg0: i32) -> (i32, i32) {
    %c0_i32 = arith.constant 0 : i32
    %c0_i32_0 = arith.constant 0 : i32
    %c0_i32_1 = arith.constant 0 : i32
    return %c0_i32, %c0_i32_0 : i32, i32
  }
  func.func @transform_8(%arg0: i32) -> (i32, i32) {
    %c0_i32 = arith.constant 0 : i32
    %c0_i32_0 = arith.constant 0 : i32
    %c0_i32_1 = arith.constant 0 : i32
    return %c0_i32, %c0_i32_0 : i32, i32
  }
  func.func @transform_9(%arg0: i32) -> (i32, i32) {
    %c0_i32 = arith.constant 0 : i32
    %c0_i32_0 = arith.constant 0 : i32
    %c0_i32_1 = arith.constant 0 : i32
    return %c0_i32, %c0_i32_0 : i32, i32
  }
  func.func @transform_10(%arg0: i32) -> (i32, i32) {
    %c0_i32 = arith.constant 0 : i32
    %c0_i32_0 = arith.constant 0 : i32
    %c0_i32_1 = arith.constant 0 : i32
    return %c0_i32, %c0_i32_0 : i32, i32
  }
  func.func @transform_11(%arg0: i32) -> (i32, i32) {
    %c0_i32 = arith.constant 0 : i32
    %c0_i32_0 = arith.constant 0 : i32
    return %arg0, %c0_i32 : i32, i32
  }
}

</mosaic_0001>

<bundles_post_ra>
// kernel: tpu_custom_call.1
= control target key start
LH: loop header
LB: loop body
LE: loop exit
PB: predicated region body
PF: predicated region fallthrough
CT: control target
= control target key end

     0   :  { %v892_v47 = vmov 1983009808   ;;  %v116_v49 = vlaneseq  ;;  %s1226_s0 = inlined_call_operand.vmem [shape: f32[2,512], index: 0, kind: input, shape index: {}]   ;;  %s1227_s1 = inlined_call_operand.vmem [shape: f32[512,64], index: 1, kind: input, shape index: {}]   ;;  %s1228_s2 = inlined_call_operand.vmem [shape: f32[1,64], index: 2, kind: input, shape index: {}]   ;;  %s1229_s3 = inlined_call_operand.vmem [shape: f32[64,22], index: 3, kind: input, shape index: {}]   ;;  %s1230_s4 = inlined_call_operand.vmem [shape: f32[1,22], index: 4, kind: input, shape index: {}]   ;;  %s1231_s5 = inlined_call_operand.vmem [shape: f32[22,12], index: 5, kind: input, shape index: {}]   ;;  %s1232_s6 = inlined_call_operand.vmem [shape: f32[1,12], index: 6, kind: input, shape index: {}]   ;;  %s1233_s7 = inlined_call_operand.vmem [shape: f32[12,8], index: 7, kind: input, shape index: {}]   ;;  %s1234_s8 = inlined_call_operand.vmem [shape: f32[1,8], index: 8, kind: input, shape index: {}]   ;;  %s1235_s9 = inlined_call_operand.vmem [shape: f32[8,22], index: 9, kind: input, shape index: {}]   ;;  %s1236_s10 = inlined_call_operand.vmem [shape: f32[1,22], index: 10, kind: input, shape index: {}]   ;;  %s1237_s11 = inlined_call_operand.hbm [shape: f32[2,22], index: 11, kind: output, shape index: {}]  }
   0x1   :  { %v56_v0 = vld [vmem:[%s1227_s1 + $0x80] sm:$0xff]  ;;  %v57_v1 = vld [vmem:[%s1227_s1 + $0x88] sm:$0xff]  ;;  %v58_v11 = vld [vmem:[%s1227_s1 + $0x90] sm:$0xff]  ;;  %v114_v48 = vunpack.c.l.s4 %v892_v47 }
   0x2   :  { %v40_v2 = vld [vmem:[%s1227_s1] sm:$0xff]  ;;  %v778_v3 = vpack.c.bf16 %v57_v1, %v56_v0  ;;  %v41_v4 = vld [vmem:[%s1227_s1 + $0x8] sm:$0xff]  ;;  %v59_v13 = vld [vmem:[%s1227_s1 + $0x98] sm:$0xff]  ;;  %v117_v0 = vshrl.u32 %v116_v49, 7 }
   0x3   :  { %v88_v5 = vld [vmem:[%s1227_s1 + $0x180] sm:$0xff]  ;;  %v89_v6 = vld [vmem:[%s1227_s1 + $0x188] sm:$0xff]  ;;  %v780_v7 = vpack.c.bf16 %v41_v4, %v40_v2  ;;  %v42_v14 = vld [vmem:[%s1227_s1 + $0x10] sm:$0xff]  ;;  %v782_v16 = vpack.c.bf16 %v59_v13, %v58_v11  ;;  %v115_v63 = vunpack.c.0.s8 %v114_v48 }
   0x4   :  { %v810_v8 = vpack.c.bf16 %v89_v6, %v88_v5  ;;  %v72_v9 = vld [vmem:[%s1227_s1 + $0x100] sm:$0xff]  ;;  %v73_v10 = vld [vmem:[%s1227_s1 + $0x108] sm:$0xff]  ;;  %779 = vmatprep.subr.bf16.mxu0 %v778_v3  ;;  %v43_v15 = vld [vmem:[%s1227_s1 + $0x18] sm:$0xff] }
   0x5   :  { %v812_v12 = vpack.c.bf16 %v73_v10, %v72_v9  ;;  %781 = vmatpush3.bf16.msra.mxu0 %v780_v7  ;;  %v784_v17 = vpack.c.bf16 %v43_v15, %v42_v14  ;;  %v90_v18 = vld [vmem:[%s1227_s1 + $0x190] sm:$0xff]  ;;  %v91_v19 = vld [vmem:[%s1227_s1 + $0x198] sm:$0xff]  ;;  %v60_v23 = vld [vmem:[%s1227_s1 + $0xa0] sm:$0xff]  ;;  %v118_v13 = vsub.s32 %v115_v63, %v117_v0 }
   0x6   :  { %811 = vmatprep.subr.bf16.mxu1 %v810_v8  ;;  %v74_v20 = vld [vmem:[%s1227_s1 + $0x110] sm:$0xff]  ;;  %v814_v21 = vpack.c.bf16 %v91_v19, %v90_v18  ;;  %v75_v22 = vld [vmem:[%s1227_s1 + $0x118] sm:$0xff]  ;;  %v61_v24 = vld [vmem:[%s1227_s1 + $0xa8] sm:$0xff]  ;;  %783 = vmatprep.subr.bf16.mxu0 %v782_v16 }
   0x7   :  { %813 = vmatpush3.bf16.msra.mxu1 %v812_v12  ;;  %v816_v25 = vpack.c.bf16 %v75_v22, %v74_v20  ;;  %v786_v26 = vpack.c.bf16 %v61_v24, %v60_v23  ;;  %v44_v27 = vld [vmem:[%s1227_s1 + $0x20] sm:$0xff]  ;;  %v45_v28 = vld [vmem:[%s1227_s1 + $0x28] sm:$0xff]  ;;  %v62_v35 = vld [vmem:[%s1227_s1 + $0xb0] sm:$0xff] }
   0x8   :  { %v92_v29 = vld [vmem:[%s1227_s1 + $0x1a0] sm:$0xff]  ;;  %815 = vmatprep.subr.bf16.mxu1 %v814_v21  ;;  %v93_v30 = vld [vmem:[%s1227_s1 + $0x1a8] sm:$0xff]  ;;  %v788_v33 = vpack.c.bf16 %v45_v28, %v44_v27  ;;  %v63_v36 = vld [vmem:[%s1227_s1 + $0xb8] sm:$0xff] }
   0x9   :  { %v76_v31 = vld [vmem:[%s1227_s1 + $0x120] sm:$0xff]  ;;  %v77_v32 = vld [vmem:[%s1227_s1 + $0x128] sm:$0xff]  ;;  %785 = vmatpush3.bf16.msra.mxu0 %v784_v17  ;;  %v818_v34 = vpack.c.bf16 %v93_v30, %v92_v29  ;;  %v46_v37 = vld [vmem:[%s1227_s1 + $0x30] sm:$0xff]  ;;  %v790_v39 = vpack.c.bf16 %v63_v36, %v62_v35 }
   0xa   :  { %787 = vmatprep.subr.bf16.mxu0 %v786_v26  ;;  %v820_v38 = vpack.c.bf16 %v77_v32, %v76_v31  ;;  %v47_v40 = vld [vmem:[%s1227_s1 + $0x38] sm:$0xff]  ;;  %v94_v41 = vld [vmem:[%s1227_s1 + $0x1b0] sm:$0xff]  ;;  %v64_v46 = vld [vmem:[%s1227_s1 + $0xc0] sm:$0xff] }
   0xb   :  { %817 = vmatpush3.bf16.msra.mxu1 %v816_v25  ;;  %v95_v42 = vld [vmem:[%s1227_s1 + $0x1b8] sm:$0xff]  ;;  %v78_v44 = vld [vmem:[%s1227_s1 + $0x130] sm:$0xff]  ;;  %v65_v50 = vld [vmem:[%s1227_s1 + $0xc8] sm:$0xff]  ;;  %v792_v51 = vpack.c.bf16 %v47_v40, %v46_v37 }
   0xc   :  { %819 = vmatprep.subr.bf16.mxu1 %v818_v34  ;;  %v822_v43 = vpack.c.bf16 %v95_v42, %v94_v41  ;;  %v79_v45 = vld [vmem:[%s1227_s1 + $0x138] sm:$0xff]  ;;  %v96_v52 = vld [vmem:[%s1227_s1 + $0x1c0] sm:$0xff]  ;;  %v97_v53 = vld [vmem:[%s1227_s1 + $0x1c8] sm:$0xff]  ;;  %v794_v55 = vpack.c.bf16 %v65_v50, %v64_v46 }
   0xd   :  { %789 = vmatpush3.bf16.msra.mxu0 %v788_v33  ;;  %v824_v54 = vpack.c.bf16 %v79_v45, %v78_v44  ;;  %v48_v56 = vld [vmem:[%s1227_s1 + $0x40] sm:$0xff]  ;;  %v49_v57 = vld [vmem:[%s1227_s1 + $0x48] sm:$0xff]  ;;  %v826_v59 = vpack.c.bf16 %v97_v53, %v96_v52  ;;  %v66_v61 = vld [vmem:[%s1227_s1 + $0xd0] sm:$0xff] }
   0xe   :  { %791 = vmatprep.subr.bf16.mxu0 %v790_v39  ;;  %v80_v58 = vld [vmem:[%s1227_s1 + $0x140] sm:$0xff]  ;;  %v81_v60 = vld [vmem:[%s1227_s1 + $0x148] sm:$0xff]  ;;  %v67_v62 = vld [vmem:[%s1227_s1 + $0xd8] sm:$0xff]  ;;  %v796_v3 = vpack.c.bf16 %v49_v57, %v48_v56 }
   0xf   :  { %821 = vmatpush3.bf16.msra.mxu1 %v820_v38  ;;  %v98_v1 = vld [vmem:[%s1227_s1 + $0x1d0] sm:$0xff]  ;;  %v99_v2 = vld [vmem:[%s1227_s1 + $0x1d8] sm:$0xff]  ;;  %v828_v4 = vpack.c.bf16 %v81_v60, %v80_v58  ;;  %v798_v5 = vpack.c.bf16 %v67_v62, %v66_v61  ;;  %v68_v11 = vld [vmem:[%s1227_s1 + $0xe0] sm:$0xff] }
  0x10   :  { %823 = vmatprep.subr.bf16.mxu1 %v822_v43  ;;  %v50_v6 = vld [vmem:[%s1227_s1 + $0x50] sm:$0xff]  ;;  %v51_v7 = vld [vmem:[%s1227_s1 + $0x58] sm:$0xff]  ;;  %v830_v9 = vpack.c.bf16 %v99_v2, %v98_v1  ;;  %v69_v12 = vld [vmem:[%s1227_s1 + $0xe8] sm:$0xff] }
  0x11   :  { %793 = vmatpush3.bf16.msra.mxu0 %v792_v51  ;;  %v82_v8 = vld [vmem:[%s1227_s1 + $0x150] sm:$0xff]  ;;  %v83_v10 = vld [vmem:[%s1227_s1 + $0x158] sm:$0xff]  ;;  %v100_v14 = vld [vmem:[%s1227_s1 + $0x1e0] sm:$0xff]  ;;  %v800_v16 = vpack.c.bf16 %v51_v7, %v50_v6  ;;  %v802_v19 = vpack.c.bf16 %v69_v12, %v68_v11 }
  0x12   :  { %795 = vmatprep.subr.bf16.mxu0 %v794_v55  ;;  %v101_v15 = vld [vmem:[%s1227_s1 + $0x1e8] sm:$0xff]  ;;  %v52_v17 = vld [vmem:[%s1227_s1 + $0x60] sm:$0xff]  ;;  %v832_v18 = vpack.c.bf16 %v83_v10, %v82_v8  ;;  %v70_v25 = vld [vmem:[%s1227_s1 + $0xf0] sm:$0xff] }
  0x13   :  { %825 = vmatpush3.bf16.msra.mxu1 %v824_v54  ;;  %v53_v20 = vld [vmem:[%s1227_s1 + $0x68] sm:$0xff]  ;;  %v84_v21 = vld [vmem:[%s1227_s1 + $0x160] sm:$0xff]  ;;  %v834_v23 = vpack.c.bf16 %v101_v15, %v100_v14  ;;  %v71_v26 = vld [vmem:[%s1227_s1 + $0xf8] sm:$0xff] }
  0x14   :  { %827 = vmatprep.subr.bf16.mxu1 %v826_v59  ;;  %v39_v22 = vld [vmem:[%s1226_s0] sm:$0xff]  ;;  %v85_v24 = vld [vmem:[%s1227_s1 + $0x168] sm:$0xff]  ;;  %v102_v29 = vld [vmem:[%s1227_s1 + $0x1f0] sm:$0xff] }
  0x15   :  { %797 = vmatpush3.bf16.msra.mxu0 %v796_v3  ;;  %v119_v27 = vrot.slane %v39_v22, %v118_v13  ;;  %v112_v28 = vcombine.high %v39_v22, %v39_v22  ;;  %v103_v30 = vld [vmem:[%s1227_s1 + $0x1f8] sm:$0xff] }
  0x16   :  { %799 = vmatprep.subr.bf16.mxu0 %v798_v5 }
  0x17   :  { %829 = vmatpush3.bf16.msra.mxu1 %v828_v4 }
  0x18   :  { %831 = vmatprep.subr.bf16.mxu1 %v830_v9 }
  0x19   :  { %16 = vsyncpa [#allocation3], 0  ;;  %801 = vmatpush3.bf16.msra.mxu0 %v800_v16  ;;  %v804_v31 = vpack.c.bf16 %v53_v20, %v52_v17  ;;  %v127_v32 = vcombine.high %v119_v27, %v119_v27  ;;  %v126_v33 = vrot.slane %v112_v28, %v118_v13  ;;  %v836_v34 = vpack.c.bf16 %v85_v24, %v84_v21  ;;  %v54_v36 = vld [vmem:[%s1227_s1 + $0x70] sm:$0xff]  ;;  %v55_v37 = vld [vmem:[%s1227_s1 + $0x78] sm:$0xff]  ;;  %s897_s0 = smov [#allocation2]  }
  0x1a   :  { %803 = vmatprep.subr.bf16.mxu0 %v802_v19  ;;  %v806_v35 = vpack.c.bf16 %v71_v26, %v70_v25  ;;  %v838_v38 = vpack.c.bf16 %v103_v30, %v102_v29  ;;  %v86_v39 = vld [vmem:[%s1227_s1 + $0x170] sm:$0xff]  ;;  %v87_v40 = vld [vmem:[%s1227_s1 + $0x178] sm:$0xff]  ;;  %v808_v42 = vpack.c.bf16 %v55_v37, %v54_v36  ;;  %v274_v44 = vld [vmem:[%s1229_s3] sm:$0xff]  ;;  %v893_v47 = vmov 0.0|0.0   ;;  %s631_s23 = sshll.u32 %s897_s0, 4  ;;  %s632_s23 = int_to_ptr.vmem [resolvable:$true] %s631_s23 }
  0x1b   :  { %833 = vmatpush3.bf16.msra.mxu1 %v832_v18  ;;  %197 = vmatprep.mubr.f32.mxu0 %v127_v32  ;;  %v128_v41 = vcombine.high %v126_v33, %v126_v33  ;;  %v840_v43 = vpack.c.bf16 %v87_v40, %v86_v39  ;;  %v275_v45 = vld [vmem:[%s1229_s3 + $0x8] sm:$0xff]  ;;  %v276_v48 = vld [vmem:[%s1229_s3 + $0x10] sm:$0xff]  ;;  %v277_v49 = vld [vmem:[%s1229_s3 + $0x18] sm:$0xff]  ;;  %vm894_vm0 = vmmov 0   ;;  %v895_v57 = vmov 0.0   ;;  %p873_p1 = scmp.lt.s32.totalorder %s632_s23, %s632_s23 }
  0x1c   :  { %835 = vmatprep.subr.bf16.mxu1 %v834_v23  ;;  %v843_v46 = vpack.c.bf16 %v275_v45, %v274_v44  ;;  %v846_v50 = vpack.c.bf16 %v277_v49, %v276_v48  ;;  %v278_v51 = vld [vmem:[%s1229_s3 + $0x20] sm:$0xff]  ;;  %v279_v52 = vld [vmem:[%s1229_s3 + $0x28] sm:$0xff]  ;;  %v280_v54 = vld [vmem:[%s1229_s3 + $0x30] sm:$0xff]  ;;  %vm289_vm1 = vcmask 523264   ;;  %vm377_vm2 = vcmask 1045504  }
  0x1d   :  { %805 = vmatpush3.bf16.msra.mxu0 %v804_v31  ;;  %267 = vmatprep.mubr.f32.mxu1 %v128_v41  ;;  %v849_v53 = vpack.c.bf16 %v279_v52, %v278_v51  ;;  %v281_v55 = vld [vmem:[%s1229_s3 + $0x38] sm:$0xff]  ;;  %v363_v58 = vld [vmem:[%s1231_s5] sm:$0xff]  ;;  %v364_v59 = vld [vmem:[%s1231_s5 + $0x8] sm:$0xff]  ;;  %vm373_vm3 = vcmask 179200   ;;  %vm465_vm4 = vcmask 1043456   ;;  %vm896_vm5 = vmmov 1  }
  0x1e   :  { %807 = vmatprep.subr.bf16.mxu0 %v806_v35  ;;  %v852_v56 = vpack.c.bf16 %v281_v55, %v280_v54  ;;  %v855_v60 = vpack.c.bf16 %v364_v59, %v363_v58  ;;  %v639_v62 = vld [vmem:[%s1228_s2] ss:$0 sm:$0xff]  ;;  %v365_v7 = vld [vmem:[%s1231_s5 + $0x10] sm:$0x3f]  ;;  %v453_v13 = vld [vmem:[%s1233_s7 + $0x8] sm:$0xf] }
  0x1f   :  { %837 = vmatpush3.bf16.msra.mxu1 %v836_v34  ;;  %v640_v8 = vld [vmem:[%s1230_s4] ss:$0 sm:$0xff]  ;;  %vm859_vm6 = vmpackc.low %vm465_vm4, %vm896_vm5  ;;  %vm461_vm7 = vcmask 97280   ;;  %vm548_vm8 = vcmask 64512   ;;  %vm623_vm9 = vcmask 173056  }
  0x20   :  { %839 = vmatprep.subr.bf16.mxu1 %v838_v38  ;;  %v452_v12 = vld [vmem:[%s1233_s7] sm:$0xff] }
  0x21   :  { %809 = vmatpush3.bf16.msra.mxu0 %v808_v42  ;;  %v858_v14 = vpack.c.bf16 %v453_v13, %v452_v12  ;;  %v642_v15 = vld [vmem:[%s1232_s6] ss:$0 sm:$0xff] }
  0x22   :  { %842 = vmatprep.subr.bf16.mxu0 %v893_v47  ;;  %v540_v20 = vld [vmem:[%s1235_s9] sm:$0xff] }
  0x23   :  { %841 = vmatpush3.bf16.msra.mxu1 %v840_v43  ;;  %v645_v21 = vld [vmem:[%s1234_s8] ss:$0 sm:$0xff]  ;;  %s868_s8 = scalar_lea.vmem %s632_s23, 32 }
  0x24   :  { %854 = vmatprep.subr.bf16.mxu1 %v893_v47  ;;  %198 = vmatmul.mubr.f32.vlgmr.msra.gmra.mrb[0].mxu0 %v119_v27  ;;  %v648_v26 = vld [vmem:[%s1236_s10] ss:$0 sm:$0xff]  ;;  %p869_p0 = scmp.ne.s32.totalorder %s632_s23, %s868_s8  ;;  %p874_p2 = scmp.lt.s32.totalorder %s868_s8, %s868_s8 }
  0x25   :  { %844 = vmatpush3.bf16.msra.mxu0 %v843_v46  ;;  %754 = vmatprep.mubr.msk.f32.mxu0 %vm894_vm0, %v895_v57 }
  0x26   :  { %268 = vmatmul.mubr.f32.vlgmr.msra.gmra.mrb[0].mxu1 %v126_v33  ;;  %845 = vmatprep.subr.bf16.mxu0 %v893_v47  ;;  %p875_p3 = por %p874_p2, %p873_p1 }
  0x27   :  { %763 = vmatprep.mubr.msk.f32.mxu1 %vm894_vm0, %v895_v57  ;;  %856 = vmatpush3.bf16.msra.mxu1 %v855_v60 }
  0x28   :  { %761 = vmatprep.subr.mxu1 %v895_v57  ;;  %p876_p4 = pnand %p875_p3, %p869_p0 }
  0x29   :  { %847 = vmatpush3.bf16.msra.mxu0 %v846_v50 }
  0x2a   :  { %848 = vmatprep.subr.bf16.mxu0 %v893_v47 }
  0x2b   :  { %762 = vmatpush3.msk.msra.mxu1 %vm377_vm2, %v365_v7 }
  0x2c   :  { %857 = vmatprep.subr.bf16.mxu1 %v893_v47 }
  0x2d   :  { %850 = vmatpush3.bf16.msra.mxu0 %v849_v53 }
  0x2e   :  { %851 = vmatprep.subr.bf16.mxu0 %v893_v47 }
  0x31   :  { %853 = vmatpush3.bf16.msra.mxu0 %v852_v56 }
  0xf7   :  { %v682_v61 = vpop.f32.mrb[0].mxu0 }
  0xf8   :  { %v683_v63 = vpop.f32.mrb[1].mxu0 }
  0xf9   :  { %v717_v0 = vpop.f32.mrb[0].mxu1  ;;  %v684_v1 = vadd.f32 %v683_v63, %v682_v61 }
  0xfa   :  { %v718_v2 = vpop.f32.mrb[1].mxu1 }
  0xfb   :  { %v719_v3 = vadd.f32 %v718_v2, %v717_v0  ;;  %v200_v4 = vadd.f32 %v684_v1, %v639_v62 }
  0xfd   :  { %v270_v5 = vadd.f32 %v719_v3, %v200_v4 }
  0xff   :  { %v273_v6 = vmax.f32 %v270_v5, 0.0 }
 0x101   :  { %755 = vmatmul.mubr.msk.f32.vlgmr.msra.gmra.mrb[2].mxu0 %vm289_vm1, %v273_v6 }
 0x1d4   :  { %v359_v9 = vpop.f32.mrb[2].mxu0 }
 0x1d5   :  { %v360_v10 = vadd.f32 %v640_v8, %v359_v9  ;;  %v756_v11 = vpop.f32.mrb[3].mxu0 }
 0x1d7   :  { %764 = vmatmul.mubr.msk.f32.vlgmr.msra.gmra.mrb[2].mxu1 %vm373_vm3, %v360_v10 }
 0x1d8   :  { %770 = vmatprep.mubr.msk.f32.mxu1 %vm894_vm0, %v895_v57  ;;  %860 = vmatpush3.bf16.msk.msra.mxu1 %vm859_vm6, %v858_v14 }
 0x1d9   :  { %773 = vmatprep.subr.mxu1 %v895_v57 }
 0x2aa   :  { %v447_v16 = vpop.f32.mrb[2].mxu1 }
 0x2ab   :  { %v448_v17 = vadd.f32 %v642_v15, %v447_v16  ;;  %v765_v18 = vpop.f32.mrb[3].mxu1 }
 0x2ad   :  { %v451_v19 = vmax.f32 %v448_v17, 0.0 }
 0x2af   :  { %771 = vmatmul.mubr.msk.f32.vlgmr.msra.gmra.mrb[4].mxu1 %vm461_vm7, %v451_v19 }
 0x2b0   :  { %775 = vmatprep.mubr.msk.f32.mxu1 %vm894_vm0, %v895_v57  ;;  %774 = vmatpush3.msra.mxu1 %v540_v20 }
 0x382   :  { %v535_v22 = vpop.f32.mrb[4].mxu1 }
 0x383   :  { %v536_v23 = vadd.f32 %v645_v21, %v535_v22  ;;  %v772_v24 = vpop.f32.mrb[5].mxu1 }
 0x385   :  { %v539_v25 = vmax.f32 %v536_v23, 0.0 }
 0x387   :  { %776 = vmatmul.mubr.msk.f32.vlgmr.msra.gmra.mrb[6].mxu1 %vm548_vm8, %v539_v25 }
 0x45a   :  { %v618_v27 = vpop.f32.mrb[6].mxu1 }
 0x45b   :  { %v619_v28 = vadd.f32 %v648_v26, %v618_v27  ;;  %v777_v29 = vpop.f32.mrb[7].mxu1 }
 0x45d   :  { %v622_v30 = vadd.f32 %v619_v28, %v360_v10 }
 0x45f   :  { %624 = vst.msk [vmem:[#allocation2] sm:$0x3] %vm623_vm9, %v622_v30 }
 0x460   :  { %879 = shalt.err (!%p876_p4)
}
 0x461   :  { %s880_s10 = scalar_lea.hbm %s1237_s11, 32 }
 0x462   :  { %p881_p5 = scmp.ne.s32.totalorder %s1237_s11, %s880_s10  ;;  %p884_p6 = scmp.lt.u32.totalorder %s880_s10, %s1237_s11 }
 0x464   :  { %p886_p7 = pnand %p884_p6, %p881_p5 }
 0x466   :  { %889 = shalt.err (!%p886_p7)
}
 0x467   :  { %634 = dma.vmem_to_hbm [thread:$0]  %s632_s23, 32, %s1237_s11, [#allocation3]  }
 0x468   :  { %890 = dma.done.wait [#allocation3], 32  }
 0x469   :  { %891 = vsyncadd [#allocation3], 4294967264 }
 0x46a   :  { %638 = vsyncpa [#allocation3], 1 }

</bundles_post_ra>
